<compile_context>
chip_gen: v5e
topology: v5e:2x2
jax: 0.10.0
libtpu: 0.0.40
codegen_flags: <defaults>
</compile_context>

<pallas_src>
import functools

import jax
import jax.numpy as jnp
from jax.experimental import pallas as pl
from jax.experimental.pallas import tpu as pltpu


def _attn_pool_kernel(s_ref, bid_ref, x_ref, out_ref, m_sc, l_sc):
    """grid = (H tiles ['parallel'], node tiles ['arbitrary', innermost])."""
    nj = pl.program_id(1)
    b_pad, tn = bid_ref.shape[0] * 0 + out_ref.shape[0], s_ref.shape[1]

    @pl.when(nj == 0)
    def _init():
        m_sc[...] = jnp.full_like(m_sc, -1e30)
        l_sc[...] = jnp.zeros_like(l_sc)
        out_ref[...] = jnp.zeros_like(out_ref)

    s = s_ref[...]                          # [1, TN]  per-node GraphConv logits
    bid = bid_ref[...]                      # [1, TN]  graph id per node (-1 = pad)
    x = x_ref[...]                          # [TN, TH] node features

    # In-kernel membership mask: row r owns node j  <=>  bid[j] == r.
    rows = jax.lax.broadcasted_iota(jnp.int32, (b_pad, tn), 0)     # [B_pad, TN]
    mask = rows == bid                                             # [B_pad, TN]

    neg_big = jnp.float32(-1e30)
    masked = jnp.where(mask, s, neg_big)                           # [B_pad, TN]
    m_new = jnp.maximum(m_sc[...],
                        jnp.max(masked, axis=-1, keepdims=True))   # [B_pad, 1]
    alpha = jnp.exp(m_sc[...] - m_new)                             # [B_pad, 1]
    e = jnp.where(mask, jnp.exp(masked - m_new), 0.0)              # [B_pad, TN]

    l_sc[...] = alpha * l_sc[...] + jnp.sum(e, axis=-1, keepdims=True)
    # Output block is resident across the node axis (index_map ignores nj):
    # accumulate directly into it, rescaling by alpha for the online softmax.
    out_ref[...] = alpha * out_ref[...] + jnp.dot(
        e, x, preferred_element_type=jnp.float32)                  # [B_pad, TH]
    m_sc[...] = m_new

    @pl.when(nj == pl.num_programs(1) - 1)
    def _finalize():
        # Padded / empty graph rows have l == 0 -> output 0, not NaN.
        denom = jnp.maximum(l_sc[...], jnp.float32(1e-30))
        out_ref[...] = out_ref[...] / denom


def _round_up(v, m):
    return ((v + m - 1) // m) * m


def _pick_tile(total, cap):
    """Largest multiple of 128 that divides `total` and is <= cap (>=128)."""
    best = 128
    t = 128
    while t <= min(total, cap):
        if total % t == 0:
            best = t
        t += 128
    return best


@functools.partial(jax.jit, static_argnames=("num_graphs",))
def global_attention_pool(x, edge_index, batch, w_rel, w_root, bias, num_graphs):
    n, h = x.shape
    src, dst = edge_index[0], edge_index[1]

    x32 = x.astype(jnp.float32)

    # Fused GraphConv projections: [N, 2] (col 0 = rel head, col 1 = root head).
    w2 = jnp.concatenate([w_rel, w_root], axis=1).astype(jnp.float32)   # [H, 2]
    proj = x32 @ w2                                                     # [N, 2]

    # Reassociated neighbour aggregation on the scalar rel-projection, O(E).
    # TODO(synk): the irregular scatter-add over edge_index stays in XLA; a
    # scalar-prefetched edge-list Pallas path exists but is not worth it at O(E).
    agg = jax.ops.segment_sum(proj[src, 0], dst, num_segments=n)        # [N]
    logits = agg + proj[:, 1] + bias.astype(jnp.float32)[0]             # [N]

    # Pad to TPU-friendly shapes: nodes on the 128-lane axis, graphs on sublanes,
    # features padded to a multiple of 128 for unmasked output stores.
    n_pad = _round_up(n, 128)
    h_pad = _round_up(h, 128)
    b_pad = _round_up(num_graphs, 8)

    # Tiny per-node rows: logits + graph ids (pad id = -1, never matches a row).
    s_p = jnp.zeros((1, n_pad), jnp.float32).at[0, :n].set(logits)
    bid_p = jnp.full((1, n_pad), -1, jnp.int32).at[0, :n].set(
        batch.astype(jnp.int32))

    # Only re-materialize x when padding is actually needed (static check);
    # padded node rows are exact zeros, so e==0 keeps them out of the pool.
    if n == n_pad and h == h_pad:
        x_p = x32
    else:
        x_p = jnp.zeros((n_pad, h_pad), jnp.float32).at[:n, :h].set(x32)

    # Tile selection: large blocks amortize the ~0.35us per-step overhead, but
    # the double-buffered x tile is capped at ~32 MiB so v7x's 64 MiB VMEM is
    # safe (v5e/v6e have 128 MiB and are strictly looser).
    tn = _pick_tile(n_pad, 2048)
    th = _pick_tile(h_pad, 2048)
    if h_pad >= 256:
        # Keep >= 2 parallel H tiles so both v7x TensorCores get work; on 1-TC
        # chips this only re-streams the tiny [1, N] logits row per H tile.
        th = min(th, _pick_tile(h_pad, h_pad // 2))
    while tn * th * 4 * 2 > 32 * 1024 * 1024 and tn > 128:
        tn = _pick_tile(n_pad, tn // 2)

    grid = (h_pad // th, n_pad // tn)

    out = pl.pallas_call(
        _attn_pool_kernel,
        out_shape=jax.ShapeDtypeStruct((b_pad, h_pad), jnp.float32),
        grid_spec=pltpu.PrefetchScalarGridSpec(
            num_scalar_prefetch=0,
            grid=grid,
            in_specs=[
                pl.BlockSpec((1, tn), lambda hb, nb: (0, nb)),      # logits row
                pl.BlockSpec((1, tn), lambda hb, nb: (0, nb)),      # graph ids
                pl.BlockSpec((tn, th), lambda hb, nb: (nb, hb)),    # x features
            ],
            out_specs=pl.BlockSpec((b_pad, th), lambda hb, nb: (0, hb)),
            scratch_shapes=[
                pltpu.VMEM((b_pad, 1), jnp.float32),    # running max
                pltpu.VMEM((b_pad, 1), jnp.float32),    # running sum
            ],
        ),
        compiler_params=pltpu.CompilerParams(
            dimension_semantics=("parallel", "arbitrary"),
            vmem_limit_bytes=48 * 1024 * 1024,
        ),
    )(s_p, bid_p, x_p)

    return out[:num_graphs, :h]


def _reference(x, edge_index, batch, w_rel, w_root, bias, num_graphs):
    """Pure-JAX reference mirroring PyG GraphConv + softmax + global_add_pool."""
    n = x.shape[0]
    src, dst = edge_index[0], edge_index[1]
    agg = jax.ops.segment_sum(x[src], dst, num_segments=n)
    s = agg @ w_rel + x @ w_root + bias                                # [N, 1]
    s0 = s[:, 0]
    seg_max = jax.ops.segment_max(s0, batch, num_segments=num_graphs)
    e = jnp.exp(s0 - seg_max[batch])
    seg_sum = jax.ops.segment_sum(e, batch, num_segments=num_graphs)
    scores = (e / seg_sum[batch])[:, None]
    return jax.ops.segment_sum(x * scores, batch, num_segments=num_graphs)


if __name__ == "__main__":
    key = jax.random.PRNGKey(0)
    k_x, k_e0, k_e1, k_wr, k_wl, k_b = jax.random.split(key, 6)

    N, H, B, E_per_graph = 16, 32, 2, 12  # 8 nodes per graph

    x = jax.random.normal(k_x, (N, H), dtype=jnp.float32)
    batch = jnp.concatenate([jnp.zeros(8, jnp.int32), jnp.ones(8, jnp.int32)])

    # Random within-graph edges.
    src0 = jax.random.randint(k_e0, (E_per_graph,), 0, 8)
    dst0 = jax.random.randint(k_e1, (E_per_graph,), 0, 8)
    src1 = jax.random.randint(k_e0, (E_per_graph,), 8, 16)
    dst1 = jax.random.randint(k_e1, (E_per_graph,), 8, 16)
    edge_index = jnp.stack([jnp.concatenate([src0, src1]),
                            jnp.concatenate([dst0, dst1])]).astype(jnp.int32)

    # Deterministic GraphConv(H, 1) parameters.
    w_rel = 0.1 * jax.random.normal(k_wr, (H, 1), dtype=jnp.float32)
    w_root = 0.1 * jax.random.normal(k_wl, (H, 1), dtype=jnp.float32)
    bias = 0.1 * jax.random.normal(k_b, (1,), dtype=jnp.float32)

    gx = global_attention_pool(x, edge_index, batch, w_rel, w_root, bias, B)
    gx = jax.block_until_ready(gx)

    ref = _reference(x, edge_index, batch, w_rel, w_root, bias, B)
    assert gx.shape == (B, H)
    assert jnp.allclose(gx, ref, rtol=1e-5, atol=1e-5), (gx, ref)

    print("KERNEL_OK")
</pallas_src>

<mosaic_0001>
module attributes {stable_mosaic.version = 11 : i64} {
  func.func @_attn_pool_kernel(%arg0: i32, %arg1: i32, %arg2: memref<1x128xf32, #tpu.memory_space<vmem>>, %arg3: memref<1x128xi32, #tpu.memory_space<vmem>>, %arg4: memref<128x128xf32, #tpu.memory_space<vmem>>, %arg5: memref<8x128xf32, #tpu.memory_space<vmem>>, %arg6: memref<8x1xf32, #tpu.memory_space<vmem>>, %arg7: memref<8x1xf32, #tpu.memory_space<vmem>>) attributes {dimension_semantics = [#tpu.dimension_semantics<parallel>, #tpu.dimension_semantics<arbitrary>], iteration_bounds = array<i64: 1, 1>, scalar_prefetch = 0 : i64, scratch_operands = 2 : i64, tpu.core_type = #tpu.core_type<tc>, window_params = [{transform_indices = @transform_0, window_bounds = array<i64: 1, 128>}, {transform_indices = @transform_1, window_bounds = array<i64: 1, 128>}, {transform_indices = @transform_2, window_bounds = array<i64: 128, 128>}, {transform_indices = @transform_3, window_bounds = array<i64: 8, 128>}]} {
    %c0_i32 = arith.constant 0 : i32
    %0 = arith.cmpi eq, %arg1, %c0_i32 : i32
    %1 = arith.extui %0 : i1 to i32
    %c0_i32_0 = arith.constant 0 : i32
    %2 = arith.cmpi ne, %1, %c0_i32_0 : i32
    scf.if %2 {
      %cst_26 = arith.constant -1.000000e+30 : f32
      %41 = vector.broadcast %cst_26 : f32 to vector<8x1xf32>
      %c0_27 = arith.constant 0 : index
      %c0_28 = arith.constant 0 : index
      %42 = vector.load %arg6[%c0_27, %c0_28] : memref<8x1xf32, #tpu.memory_space<vmem>>, vector<8x1xf32>
      tpu.vector_store %arg6[%c0_27, %c0_28], %41 {strides = array<i32>} : memref<8x1xf32, #tpu.memory_space<vmem>>, vector<8x1xf32>,
      %cst_29 = arith.constant 0.000000e+00 : f32
      %43 = vector.broadcast %cst_29 : f32 to vector<8x1xf32>
      %c0_30 = arith.constant 0 : index
      %c0_31 = arith.constant 0 : index
      %44 = vector.load %arg7[%c0_30, %c0_31] : memref<8x1xf32, #tpu.memory_space<vmem>>, vector<8x1xf32>
      tpu.vector_store %arg7[%c0_30, %c0_31], %43 {strides = array<i32>} : memref<8x1xf32, #tpu.memory_space<vmem>>, vector<8x1xf32>,
      %cst_32 = arith.constant 0.000000e+00 : f32
      %45 = vector.broadcast %cst_32 : f32 to vector<8x128xf32>
      %c0_33 = arith.constant 0 : index
      %c0_34 = arith.constant 0 : index
      %46 = vector.load %arg5[%c0_33, %c0_34] : memref<8x128xf32, #tpu.memory_space<vmem>>, vector<8x128xf32>
      tpu.vector_store %arg5[%c0_33, %c0_34], %45 {strides = array<i32>} : memref<8x128xf32, #tpu.memory_space<vmem>>, vector<8x128xf32>,
    } else {
    }
    %c0 = arith.constant 0 : index
    %c0_1 = arith.constant 0 : index
    %3 = vector.load %arg2[%c0, %c0_1] : memref<1x128xf32, #tpu.memory_space<vmem>>, vector<1x128xf32>
    %c0_2 = arith.constant 0 : index
    %c0_3 = arith.constant 0 : index
    %4 = vector.load %arg3[%c0_2, %c0_3] : memref<1x128xi32, #tpu.memory_space<vmem>>, vector<1x128xi32>
    %c0_4 = arith.constant 0 : index
    %c0_5 = arith.constant 0 : index
    %5 = vector.load %arg4[%c0_4, %c0_5] : memref<128x128xf32, #tpu.memory_space<vmem>>, vector<128x128xf32>
    %6 = tpu.iota {dimensions = array<i32: 0>} : vector<8x128xi32>
    %7 = vector.broadcast %4 : vector<1x128xi32> to vector<8x128xi32>
    %8 = arith.cmpi eq, %6, %7 : vector<8x128xi32>
    %cst = arith.constant -1.000000e+30 : f32
    %9 = vector.shape_cast %3 : vector<1x128xf32> to vector<1x128xf32>
    %10 = vector.broadcast %9 : vector<1x128xf32> to vector<8x128xf32>
    %11 = vector.broadcast %cst : f32 to vector<8x128xf32>
    %12 = arith.select %8, %10, %11 : vector<8x128xi1>, vector<8x128xf32>
    %c0_6 = arith.constant 0 : index
    %c0_7 = arith.constant 0 : index
    %13 = vector.load %arg6[%c0_6, %c0_7] : memref<8x1xf32, #tpu.memory_space<vmem>>, vector<8x1xf32>
    %cst_8 = arith.constant dense<0xFF800000> : vector<8xf32>
    %14 = vector.multi_reduction <maximumf>, %12, %cst_8 [1] : vector<8x128xf32> to vector<8xf32>
    %15 = vector.shape_cast %14 : vector<8xf32> to vector<8x1xf32>
    %16 = arith.maximumf %13, %15 : vector<8x1xf32>
    %c0_9 = arith.constant 0 : index
    %c0_10 = arith.constant 0 : index
    %17 = vector.load %arg6[%c0_9, %c0_10] : memref<8x1xf32, #tpu.memory_space<vmem>>, vector<8x1xf32>
    %18 = arith.subf %17, %16 : vector<8x1xf32>
    %19 = math.exp %18 : vector<8x1xf32>
    %20 = vector.broadcast %16 : vector<8x1xf32> to vector<8x128xf32>
    %21 = arith.subf %12, %20 : vector<8x128xf32>
    %22 = math.exp %21 : vector<8x128xf32>
    %cst_11 = arith.constant 0.000000e+00 : f32
    %23 = vector.broadcast %cst_11 : f32 to vector<8x128xf32>
    %24 = arith.select %8, %22, %23 : vector<8x128xi1>, vector<8x128xf32>
    %c0_12 = arith.constant 0 : index
    %c0_13 = arith.constant 0 : index
    %25 = vector.load %arg7[%c0_12, %c0_13] : memref<8x1xf32, #tpu.memory_space<vmem>>, vector<8x1xf32>
    %26 = arith.mulf %19, %25 : vector<8x1xf32>
    %cst_14 = arith.constant dense<0.000000e+00> : vector<8xf32>
    %27 = vector.multi_reduction <add>, %24, %cst_14 [1] : vector<8x128xf32> to vector<8xf32>
    %28 = vector.shape_cast %27 : vector<8xf32> to vector<8x1xf32>
    %29 = arith.addf %26, %28 : vector<8x1xf32>
    %c0_15 = arith.constant 0 : index
    %c0_16 = arith.constant 0 : index
    %30 = vector.load %arg7[%c0_15, %c0_16] : memref<8x1xf32, #tpu.memory_space<vmem>>, vector<8x1xf32>
    tpu.vector_store %arg7[%c0_15, %c0_16], %29 {strides = array<i32>} : memref<8x1xf32, #tpu.memory_space<vmem>>, vector<8x1xf32>,
    %c0_17 = arith.constant 0 : index
    %c0_18 = arith.constant 0 : index
    %31 = vector.load %arg5[%c0_17, %c0_18] : memref<8x128xf32, #tpu.memory_space<vmem>>, vector<8x128xf32>
    %32 = vector.broadcast %19 : vector<8x1xf32> to vector<8x128xf32>
    %33 = arith.mulf %32, %31 : vector<8x128xf32>
    %cst_19 = arith.constant dense<0.000000e+00> : vector<8x128xf32>
    %34 = tpu.matmul %24, %5, %cst_19 {dimension_numbers = #tpu.dot_dimension_numbers<[1], [0], [0], [1], [0, 0, 1, 1], [], []>} : vector<8x128xf32>, vector<128x128xf32>, vector<8x128xf32> -> vector<8x128xf32>
    %35 = arith.addf %33, %34 : vector<8x128xf32>
    %c0_20 = arith.constant 0 : index
    %c0_21 = arith.constant 0 : index
    %36 = vector.load %arg5[%c0_20, %c0_21] : memref<8x128xf32, #tpu.memory_space<vmem>>, vector<8x128xf32>
    tpu.vector_store %arg5[%c0_20, %c0_21], %35 {strides = array<i32>} : memref<8x128xf32, #tpu.memory_space<vmem>>, vector<8x128xf32>,
    %c0_22 = arith.constant 0 : index
    %c0_23 = arith.constant 0 : index
    %37 = vector.load %arg6[%c0_22, %c0_23] : memref<8x1xf32, #tpu.memory_space<vmem>>, vector<8x1xf32>
    tpu.vector_store %arg6[%c0_22, %c0_23], %16 {strides = array<i32>} : memref<8x1xf32, #tpu.memory_space<vmem>>, vector<8x1xf32>,
    %c0_i32_24 = arith.constant 0 : i32
    %38 = arith.cmpi eq, %arg1, %c0_i32_24 : i32
    %39 = arith.extui %38 : i1 to i32
    %c0_i32_25 = arith.constant 0 : i32
    %40 = arith.cmpi ne, %39, %c0_i32_25 : i32
    scf.if %40 {
      %c0_26 = arith.constant 0 : index
      %c0_27 = arith.constant 0 : index
      %41 = vector.load %arg7[%c0_26, %c0_27] : memref<8x1xf32, #tpu.memory_space<vmem>>, vector<8x1xf32>
      %cst_28 = arith.constant 1.000000e-30 : f32
      %42 = vector.broadcast %cst_28 : f32 to vector<8x1xf32>
      %43 = arith.maximumf %41, %42 : vector<8x1xf32>
      %c0_29 = arith.constant 0 : index
      %c0_30 = arith.constant 0 : index
      %44 = vector.load %arg5[%c0_29, %c0_30] : memref<8x128xf32, #tpu.memory_space<vmem>>, vector<8x128xf32>
      %45 = vector.broadcast %43 : vector<8x1xf32> to vector<8x128xf32>
      %46 = arith.divf %44, %45 : vector<8x128xf32>
      %c0_31 = arith.constant 0 : index
      %c0_32 = arith.constant 0 : index
      %47 = vector.load %arg5[%c0_31, %c0_32] : memref<8x128xf32, #tpu.memory_space<vmem>>, vector<8x128xf32>
      tpu.vector_store %arg5[%c0_31, %c0_32], %46 {strides = array<i32>} : memref<8x128xf32, #tpu.memory_space<vmem>>, vector<8x128xf32>,
    } else {
    }
    return
  }
  func.func @transform_0(%arg0: i32, %arg1: i32) -> (i32, i32) {
    %c0_i32 = arith.constant 0 : i32
    %c0_i32_0 = arith.constant 0 : i32
    return %c0_i32, %arg1 : i32, i32
  }
  func.func @transform_1(%arg0: i32, %arg1: i32) -> (i32, i32) {
    %c0_i32 = arith.constant 0 : i32
    %c0_i32_0 = arith.constant 0 : i32
    return %c0_i32, %arg1 : i32, i32
  }
  func.func @transform_2(%arg0: i32, %arg1: i32) -> (i32, i32) {
    %c0_i32 = arith.constant 0 : i32
    return %arg1, %arg0 : i32, i32
  }
  func.func @transform_3(%arg0: i32, %arg1: i32) -> (i32, i32) {
    %c0_i32 = arith.constant 0 : i32
    %c0_i32_0 = arith.constant 0 : i32
    return %c0_i32, %arg0 : i32, i32
  }
}

</mosaic_0001>

<bundles_post_ra>
// kernel: global_attention_pool.1
= control target key start
LH: loop header
LB: loop body
LE: loop exit
PB: predicated region body
PF: predicated region fallthrough
CT: control target
= control target key end

     0   :  { %v40_v0 = vlaneseq  ;;  %vm18_vm0 = vcmask 7168   ;;  %v147_v4 = vmov -1e+30   ;;  %v148_v6 = vmov 0   ;;  %s246_s0 = inlined_call_operand.vmem [shape: f32[1,128], index: 0, kind: input, shape index: {}]   ;;  %s247_s1 = inlined_call_operand.vmem [shape: s32[1,128], index: 1, kind: input, shape index: {}]   ;;  %s248_s2 = inlined_call_operand.vmem [shape: f32[128,128], index: 2, kind: input, shape index: {}]   ;;  %s249_s3 = inlined_call_operand.vmem [shape: f32[8,128], index: 3, kind: output, shape index: {}]  }
   0x1   :  { %v173_v1 = vld [vmem:[%s247_s1] ss:$0 sm:$0xff]  ;;  %19 = vst.msk [vmem:[#allocation2] sm:$0xff] %vm18_vm0, %v147_v4  ;;  %136 = vset.pattern.permute.xlu0 %v148_v6  ;;  %138 = vset.pattern.permute.xlu2 %v148_v6  ;;  %v149_v7 = vmov 0.0   ;;  %v39_v8 = vld [vmem:[%s248_s2 + $0x78] sm:$0xff]  ;;  %v38_v9 = vld [vmem:[%s248_s2 + $0x70] sm:$0xff] }
   0x2   :  { %v175_v2 = vshrl.u32 %v40_v0, 7  ;;  %v140_v3 = vld [vmem:[%s246_s0] ss:$0 sm:$0xff]  ;;  %137 = vset.pattern.permute.xlu1 %v148_v6  ;;  %20 = vst.msk [vmem:[#allocation3] sm:$0xff] %vm18_vm0, %v149_v7  ;;  %78 = vmatpush.msra.mxu0 %v39_v8  ;;  %v37_v10 = vld [vmem:[%s248_s2 + $0x68] sm:$0xff]  ;;  %v35_v18 = vld [vmem:[%s248_s2 + $0x58] sm:$0xff] }
   0x3   :  { %v36_v11 = vld [vmem:[%s248_s2 + $0x60] sm:$0xff]  ;;  %v34_v19 = vld [vmem:[%s248_s2 + $0x50] sm:$0xff]  ;;  %v33_v20 = vld [vmem:[%s248_s2 + $0x48] sm:$0xff] }
   0x4   :  { %vm43_vm1 = vcmp.eq.s32.totalorder %v175_v2, %v173_v1  ;;  %79 = vmatpush.msra.mxu0 %v38_v9  ;;  %v32_v21 = vld [vmem:[%s248_s2 + $0x40] sm:$0xff]  ;;  %v31_v22 = vld [vmem:[%s248_s2 + $0x38] sm:$0xff]  ;;  %v30_v23 = vld [vmem:[%s248_s2 + $0x30] sm:$0xff] }
   0x5   :  { %v47_v5 = vsel %vm43_vm1, %v140_v3, -1e+30  ;;  %v29_v24 = vld [vmem:[%s248_s2 + $0x28] sm:$0xff]  ;;  %v28_v25 = vld [vmem:[%s248_s2 + $0x20] sm:$0xff]  ;;  %v27_v26 = vld [vmem:[%s248_s2 + $0x18] sm:$0xff] }
   0x6   :  { %49 = vmax.xlane.f32.xlu0 %v47_v5  ;;  %80 = vmatpush.msra.mxu0 %v37_v10  ;;  %v26_v27 = vld [vmem:[%s248_s2 + $0x10] sm:$0xff]  ;;  %v25_v28 = vld [vmem:[%s248_s2 + $0x8] sm:$0xff]  ;;  %v24_v29 = vld [vmem:[%s248_s2] sm:$0xff] }
   0x8   :  { %81 = vmatpush.msra.mxu0 %v36_v11  ;;  %v48_v12 = vld [vmem:[#allocation2] sm:$0xff] }
   0x9   :  { %v64_v35 = vld [vmem:[#allocation3] sm:$0xff] }
   0xa   :  { %82 = vmatpush.msra.mxu0 %v35_v18 }
   0xc   :  { %83 = vmatpush.msra.mxu0 %v34_v19 }
   0xe   :  { %84 = vmatpush.msra.mxu0 %v33_v20 }
  0x10   :  { %85 = vmatpush.msra.mxu0 %v32_v21 }
  0x12   :  { %86 = vmatpush.msra.mxu0 %v31_v22 }
  0x14   :  { %87 = vmatpush.msra.mxu0 %v30_v23 }
  0x16   :  { %88 = vmatpush.msra.mxu0 %v29_v24 }
  0x18   :  { %89 = vmatpush.msra.mxu0 %v28_v25 }
  0x1a   :  { %90 = vmatpush.msra.mxu0 %v27_v26 }
  0x1c   :  { %91 = vmatpush.msra.mxu0 %v26_v27 }
  0x1e   :  { %92 = vmatpush.msra.mxu0 %v25_v28 }
  0x20   :  { %93 = vmatpush.msra.mxu0 %v24_v29 }
  0x79   :  { %v50_v13 = vpop.xlane.xlu0 %49 }
  0x7a   :  { %v51_v14 = vmax.f32 %v48_v12, %v50_v13 }
  0x7c   :  { %v52_v15 = vsub.f32 %v48_v12, %v51_v14  ;;  %100 = vst.msk [vmem:[#allocation2] sm:$0xff] %vm18_vm0, %v51_v14  ;;  %57 = vperm.xlu0 %136, %v51_v14  }
  0x7e   :  { %v53_v16 = vmul.f32 1.442695, %v52_v15 }
  0x80   :  { %141 = vpow2.f32 %v53_v16 }
  0x86   :  { %v142_v17 = vpop.eup %141 }
  0x87   :  { %74 = vperm.xlu2 %138, %v142_v17   ;;  %v65_v36 = vmul.f32 %v142_v17, %v64_v35 }
  0xe1   :  { %v75_v45 = vpop.permute.xlu2 %74 }
  0xe2   :  { %v77_v50 = vmul.f32 0.0, %v75_v45 }
  0xee   :  { %v58_v30 = vpop.permute.xlu0 %57 }
  0xef   :  { %v60_v31 = vsub.f32 %v47_v5, %v58_v30 }
  0xf1   :  { %v61_v32 = vmul.f32 1.442695, %v60_v31 }
  0xf3   :  { %143 = vpow2.f32 %v61_v32 }
  0xf9   :  { %v144_v33 = vpop.eup %143 }
  0xfa   :  { %132 = vmatmul.msk.f32.vlgmr.msra.gmra.mxu0 %vm43_vm1, %v144_v33  ;;  %v63_v34 = vsel %vm43_vm1, %v144_v33, 0.0 }
  0xfb   :  { %66 = vadd.xlane.f32.xlu1 %v63_v34 }
 0x16e   :  { %v67_v37 = vpop.xlane.xlu1 %66 }
 0x16f   :  { %v68_v38 = vadd.f32 %v67_v37, %v65_v36 }
 0x171   :  { %70 = vst.msk [vmem:[#allocation3] sm:$0xff] %vm18_vm0, %v68_v38 }
 0x177   :  { %v95_v49 = vpop.f32.mrf.mxu0 }
 0x178   :  { %v104_v39 = vld [vmem:[#allocation3] sm:$0xff]  ;;  %v98_v53 = vadd.f32 %v95_v49, %v77_v50 }
 0x179   :  { %v105_v40 = vmax.f32 %v104_v39, 1e-30 }
 0x17b   :  { %109 = vperm.xlu1 %137, %v105_v40  }
 0x1ed   :  { %v110_v41 = vpop.permute.xlu1 %109 }
 0x1ee   :  { %145 = vrcp.f32 %v110_v41  ;;  %v123_v46 = vand.u32 2147483648, %v110_v41  ;;  %v121_v48 = vand.u32 2147483647, %v110_v41  ;;  %vm117_vm3 = vweird.f32 %v110_v41 }
 0x1f0   :  { %v124_v52 = vor.u32 1.1754944e-38, %v123_v46  ;;  %vm122_vm5 = vcmp.eq.f32.partialorder %v121_v48, 8.507059e+37 }
 0x1f4   :  { %v146_v42 = vpop.eup %145 }
 0x1f5   :  { %v113_v43 = vmul.f32 %v146_v42, %v110_v41  ;;  %vm118_vm2 = vweird.f32 %v146_v42 }
 0x1f6   :  { %vm119_vm4 = vmor %vm117_vm3, %vm118_vm2 }
 0x1f7   :  { %v114_v44 = vsub.f32 1.0, %v113_v43 }
 0x1f9   :  { %v115_v47 = vmul.f32 %v146_v42, %v114_v44 }
 0x1fb   :  { %v116_v51 = vadd.f32 %v146_v42, %v115_v47 }
 0x1fd   :  { %v120_v54 = vsel %vm119_vm4, %v146_v42, %v116_v51 }
 0x1fe   :  { %v125_v55 = vsel %vm122_vm5, %v124_v52, %v120_v54 }
 0x1ff   :  { %v126_v56 = vmul.f32 %v125_v55, %v98_v53 }
 0x201   :  { %127 = vst [vmem:[%s249_s3] sm:$0xff] %v126_v56 }

</bundles_post_ra>
